<compile_context>
chip_gen: v7x
topology: tpu7x:2x2x1
jax: 0.10.0
libtpu: 0.0.40
codegen_flags: <defaults>
</compile_context>

<pallas_src>
import functools
import math

import jax
import jax.numpy as jnp
from jax import lax
from jax.experimental import pallas as pl
from jax.experimental.pallas import tpu as pltpu


# Tile candidates: multiples of 128 keep score tiles and attn lane-slices
# vreg-aligned (unmasked vst) and keep the MXU well fed on v6e/v7x (256-wide).
# (On v5e the MXU is 128-wide, so the smaller candidates cost nothing there.)
_TILE_CANDIDATES = (512, 384, 256, 128)


def _vmem_capacity_bytes():
    """Physical VMEM of the current chip; conservative v7x default on failure."""
    try:
        return int(pltpu.get_tpu_info().vmem_capacity_bytes)
    except Exception:
        return 64 * 1024 * 1024


def _vmem_estimate_bytes(tq, tk, nk, D, S, in_bytes, out_bytes, attn_bytes,
                         mxu_bytes):
    """Rough VMEM footprint of one grid step (double-buffered blocks + scratch)."""
    lane = 128  # lane padding of (.., 1)-shaped f32 scratch
    return int(
        2 * tq * S * attn_bytes        # resident attn output block (dbl-buffered)
        + 2 * tq * D * out_bytes       # context output block
        + 2 * tq * D * in_bytes        # Q input block
        + 2 * 2 * tk * D * in_bytes    # K + V input blocks
        + tq * D * 4                   # f32 context accumulator
        + tq * D * mxu_bytes           # scaled-Q scratch (MXU operand dtype)
        + nk * tq * lane * 4           # per-kv-step running-max stash
        + 2 * tq * lane * 4            # running max / denominator
    )


def _select_tiles(S, D, in_bytes, out_bytes, attn_bytes, mxu_bytes, vmem_cap):
    """Pick (tq, tk): largest aligned tiles whose footprint fits the VMEM budget."""
    div = [t for t in _TILE_CANDIDATES if S % t == 0]
    # TODO(synk): padded/masked path when S is not a multiple of 128; the
    # full-sequence fallback below is correct but makes VMEM O(S^2) per q-tile.
    tk = div[0] if div else S
    nk = max(S // tk, 1)
    budget = int(0.55 * vmem_cap)      # headroom for compiler temporaries
    tq = None
    for t in div:
        if _vmem_estimate_bytes(t, tk, nk, D, S, in_bytes, out_bytes,
                                attn_bytes, mxu_bytes) <= budget:
            tq = t
            break
    if tq is None:
        tq = div[-1] if div else S     # smallest aligned tile, or full-S fallback
    return tq, tk


def _sdpa_kernel(q_ref, k_ref, v_ref, out_ref, attn_ref,
                 qs_sc, m_sc, l_sc, acc_sc, mstash_sc,
                 *, scale, tk, nk, mxu_dtype):
    # q_ref: (1, tq, D)   k_ref/v_ref: (1, tk, D)
    # out_ref: (1, tq, D) attn_ref: (1, tq, S)  -- both resident across kv axis
    ki = pl.program_id(2)

    @pl.when(ki == 0)
    def _prologue():
        # Fold 1/sqrt(d_k) into the resident Q tile ONCE per q-tile (hoisted
        # out of the kv loop) and cast to the MXU operand dtype.
        qs_sc[...] = (q_ref[0].astype(jnp.float32) * scale).astype(mxu_dtype)
        if nk > 1:
            m_sc[...] = jnp.full_like(m_sc, -jnp.inf)
            l_sc[...] = jnp.zeros_like(l_sc)
            acc_sc[...] = jnp.zeros_like(acc_sc)

    k = k_ref[0].astype(mxu_dtype)                              # (tk, D)
    v = v_ref[0].astype(mxu_dtype)                              # (tk, D)

    # scores = (Q/sqrt(d_k)) @ K^T: contract last dims directly (no XLU
    # transpose), native-dtype (bf16) MXU operands, f32 accumulation.
    s = lax.dot_general(
        qs_sc[...], k,
        dimension_numbers=(((1,), (1,)), ((), ())),
        preferred_element_type=jnp.float32)                     # (tq, tk) f32

    # TODO(synk): optional `mask` argument (masked_fill with -inf) not wired
    # in; this kernel implements the mask=None path of the reference module.

    if nk == 1:
        # Single kv tile: plain softmax, no online-softmax bookkeeping needed.
        m = jnp.max(s, axis=-1, keepdims=True)
        p = jnp.exp(s - m)
        inv_l = pl.reciprocal(jnp.sum(p, axis=-1, keepdims=True), approx=False)
        attn = p * inv_l                                        # (tq, S) f32
        attn_ref[0] = attn.astype(attn_ref.dtype)
        out_ref[0] = jnp.dot(attn.astype(mxu_dtype), v,
                             preferred_element_type=jnp.float32
                             ).astype(out_ref.dtype)
        return

    # ---- online softmax update (f32 statistics) ----
    m_prev = m_sc[...]                                          # (tq, 1)
    m_new = jnp.maximum(m_prev, jnp.max(s, axis=-1, keepdims=True))
    alpha = jnp.exp(m_prev - m_new)                             # (tq, 1)
    p = jnp.exp(s - m_new)                                      # (tq, tk) f32
    l_sc[...] = alpha * l_sc[...] + jnp.sum(p, axis=-1, keepdims=True)
    acc_sc[...] = alpha * acc_sc[...] + jnp.dot(
        p.astype(mxu_dtype), v, preferred_element_type=jnp.float32)
    m_sc[...] = m_new
    mstash_sc[ki] = m_new            # tiny (nk, tq, 1) stash of the running max

    # Write unnormalized probabilities straight into the resident attn slab
    # (no f32 score stash, no re-exp later). tk % 128 == 0 here, so the
    # dynamic lane slice stays vreg-aligned (unmasked stores).
    off = pl.multiple_of(ki * tk, tk)
    attn_ref[0, :, pl.ds(off, tk)] = p.astype(attn_ref.dtype)

    @pl.when(ki == nk - 1)
    def _epilogue():
        # Exact reciprocal: one (tq,1) division per q-tile, rows sum to 1.
        inv_l = pl.reciprocal(l_sc[...], approx=False)
        out_ref[0] = (acc_sc[...] * inv_l).astype(out_ref.dtype)
        m_fin = m_sc[...]

        # Rescale each tk-wide lane slice by exp(m_j - m_fin) / l: pure VPU
        # multiplies; loop (not static unroll) bounds code size / live ranges.
        @pl.loop(0, nk)
        def _rescale(j):
            r = jnp.exp(mstash_sc[j] - m_fin) * inv_l           # (tq, 1) f32
            o = pl.multiple_of(j * tk, tk)
            blk = attn_ref[0, :, pl.ds(o, tk)].astype(jnp.float32)
            attn_ref[0, :, pl.ds(o, tk)] = (blk * r).astype(attn_ref.dtype)


def scaled_dot_product_attention(Q, K, V, *, attn_dtype=None):
    """Pallas implementation of ScaledDotProductAttention.forward (mask=None).

    Q, K, V: [B, S, D]. Returns (context [B, S, D], attention [B, S, S]).
    `attn_dtype` (e.g. jnp.bfloat16) controls the attention-weights output
    dtype; for S >> D the B*S*S writeback dominates HBM traffic, so bf16 is
    close to a 2x wall-clock win.  Defaults to Q.dtype.
    """
    B, S, D = Q.shape
    assert K.shape == (B, S, D) and V.shape == (B, S, D)
    scale = 1.0 / math.sqrt(D)

    in_dtype = jnp.dtype(Q.dtype)
    out_dtype = in_dtype
    attn_dtype = jnp.dtype(attn_dtype) if attn_dtype is not None else in_dtype
    # bf16 MXU operands (native MXU path) with f32 accumulation when inputs
    # are f32; otherwise keep the input dtype.
    mxu_dtype = jnp.dtype(jnp.bfloat16) if in_dtype == jnp.float32 else in_dtype

    in_bytes = in_dtype.itemsize
    out_bytes = out_dtype.itemsize
    attn_bytes = attn_dtype.itemsize
    mxu_bytes = mxu_dtype.itemsize

    vmem_cap = _vmem_capacity_bytes()
    tq, tk = _select_tiles(S, D, in_bytes, out_bytes, attn_bytes, mxu_bytes,
                           vmem_cap)
    nq, nk = S // tq, S // tk
    if nk > 1:
        assert tk % 128 == 0, "multi-tile kv path requires 128-aligned tk"

    est = _vmem_estimate_bytes(tq, tk, nk, D, S, in_bytes, out_bytes,
                               attn_bytes, mxu_bytes)
    vmem_limit = int(min(max(32 * 1024 * 1024, 2 * est), int(0.9 * vmem_cap)))

    # TODO(synk): for D << 128 (as here) the MXU is underfilled; folding
    # multiple batch entries/heads into the tq dimension would raise
    # utilization but changes the [B, S, D] interface.
    # NOTE(v7x): B*nq is the "parallel" extent shared by the two TensorCores;
    # keep it >= 2 (ideally even) for balanced megacore work.

    kernel = functools.partial(_sdpa_kernel, scale=scale, tk=tk, nk=nk,
                               mxu_dtype=mxu_dtype)

    out_shape = (
        jax.ShapeDtypeStruct((B, S, D), out_dtype),    # context
        jax.ShapeDtypeStruct((B, S, S), attn_dtype),   # attention weights
    )

    grid_spec = pltpu.PrefetchScalarGridSpec(
        num_scalar_prefetch=0,
        grid=(B, nq, nk),
        in_specs=[
            pl.BlockSpec((1, tq, D), lambda b, qi, ki: (b, qi, 0)),   # Q
            pl.BlockSpec((1, tk, D), lambda b, qi, ki: (b, ki, 0)),   # K
            pl.BlockSpec((1, tk, D), lambda b, qi, ki: (b, ki, 0)),   # V
        ],
        out_specs=[
            pl.BlockSpec((1, tq, D), lambda b, qi, ki: (b, qi, 0)),   # context
            pl.BlockSpec((1, tq, S), lambda b, qi, ki: (b, qi, 0)),   # attn (lane-dense, resident)
        ],
        scratch_shapes=[
            pltpu.VMEM((tq, D), mxu_dtype),           # scaled Q (MXU operand)
            pltpu.VMEM((tq, 1), jnp.float32),         # running max
            pltpu.VMEM((tq, 1), jnp.float32),         # running denominator
            pltpu.VMEM((tq, D), jnp.float32),         # context accumulator
            pltpu.VMEM((nk, tq, 1), jnp.float32),     # per-kv-step running max
        ],
    )

    return pl.pallas_call(
        kernel,
        out_shape=out_shape,
        grid_spec=grid_spec,
        compiler_params=pltpu.CompilerParams(
            dimension_semantics=("parallel", "parallel", "arbitrary"),
            vmem_limit_bytes=vmem_limit,
        ),
    )(Q, K, V)


def _reference(Q, K, V):
    d_k = Q.shape[-1]
    scores = jnp.einsum("bqd,bkd->bqk", Q, K) / math.sqrt(d_k)
    attn = jax.nn.softmax(scores, axis=-1)
    ctx = jnp.einsum("bqk,bkd->bqd", attn, V)
    return ctx, attn


if __name__ == "__main__":
    B, S, D = 2, 8, 32  # batch, seq, d_model
    key = jax.random.PRNGKey(0)
    kq, kk, kv = jax.random.split(key, 3)
    Q = jax.random.normal(kq, (B, S, D), dtype=jnp.float32)
    K = jax.random.normal(kk, (B, S, D), dtype=jnp.float32)
    V = jax.random.normal(kv, (B, S, D), dtype=jnp.float32)

    ctx, attn = scaled_dot_product_attention(Q, K, V)
    jax.block_until_ready((ctx, attn))

    ctx_ref, attn_ref_ = _reference(Q, K, V)
    # Tolerances cover bf16 MXU operands (f32 accumulation).
    assert jnp.allclose(ctx, ctx_ref, atol=2e-2, rtol=2e-2), "context mismatch"
    assert jnp.allclose(attn, attn_ref_, atol=2e-2, rtol=2e-2), "attention mismatch"

    # Optional bf16 attention-weights output (halves the B*S*S HBM writeback).
    ctx_b, attn_b = scaled_dot_product_attention(Q, K, V, attn_dtype=jnp.bfloat16)
    jax.block_until_ready((ctx_b, attn_b))
    assert jnp.allclose(attn_b.astype(jnp.float32), attn_ref_,
                        atol=2e-2, rtol=2e-2), "bf16 attention mismatch"

    print("KERNEL_OK")
</pallas_src>

<mosaic_0001>
module attributes {stable_mosaic.version = 11 : i64} {
  func.func @_sdpa_kernel(%arg0: i32, %arg1: i32, %arg2: i32, %arg3: memref<1x8x32xf32, #tpu.memory_space<vmem>>, %arg4: memref<1x8x32xf32, #tpu.memory_space<vmem>>, %arg5: memref<1x8x32xf32, #tpu.memory_space<vmem>>, %arg6: memref<1x8x32xf32, #tpu.memory_space<vmem>>, %arg7: memref<1x8x8xf32, #tpu.memory_space<vmem>>, %arg8: memref<8x32xbf16, #tpu.memory_space<vmem>>, %arg9: memref<8x1xf32, #tpu.memory_space<vmem>>, %arg10: memref<8x1xf32, #tpu.memory_space<vmem>>, %arg11: memref<8x32xf32, #tpu.memory_space<vmem>>, %arg12: memref<1x8x1xf32, #tpu.memory_space<vmem>>) attributes {dimension_semantics = [#tpu.dimension_semantics<parallel>, #tpu.dimension_semantics<parallel>, #tpu.dimension_semantics<arbitrary>], iteration_bounds = array<i64: 2, 1, 1>, scalar_prefetch = 0 : i64, scratch_operands = 5 : i64, tpu.core_type = #tpu.core_type<tc>, window_params = [{transform_indices = @transform_0, window_bounds = array<i64: 1, 8, 32>}, {transform_indices = @transform_1, window_bounds = array<i64: 1, 8, 32>}, {transform_indices = @transform_2, window_bounds = array<i64: 1, 8, 32>}, {transform_indices = @transform_3, window_bounds = array<i64: 1, 8, 32>}, {transform_indices = @transform_4, window_bounds = array<i64: 1, 8, 8>}]} {
    %c0_i32 = arith.constant 0 : i32
    %0 = arith.cmpi eq, %arg2, %c0_i32 : i32
    %1 = arith.extui %0 : i1 to i32
    %c0_i32_0 = arith.constant 0 : i32
    %2 = arith.cmpi ne, %1, %c0_i32_0 : i32
    scf.if %2 {
      %c0_17 = arith.constant 0 : index
      %c0_18 = arith.constant 0 : index
      %c0_19 = arith.constant 0 : index
      %29 = vector.load %arg3[%c0_17, %c0_18, %c0_19] : memref<1x8x32xf32, #tpu.memory_space<vmem>>, vector<1x8x32xf32>
      %30 = vector.shape_cast %29 : vector<1x8x32xf32> to vector<8x32xf32>
      %cst_20 = arith.constant 0.176776692 : f32
      %31 = vector.broadcast %cst_20 : f32 to vector<8x32xf32>
      %32 = arith.mulf %30, %31 : vector<8x32xf32>
      %33 = arith.truncf %32 : vector<8x32xf32> to vector<8x32xbf16>
      %c0_21 = arith.constant 0 : index
      %c0_22 = arith.constant 0 : index
      %34 = vector.load %arg8[%c0_21, %c0_22] : memref<8x32xbf16, #tpu.memory_space<vmem>>, vector<8x32xbf16>
      tpu.vector_store %arg8[%c0_21, %c0_22], %33 {strides = array<i32>} : memref<8x32xbf16, #tpu.memory_space<vmem>>, vector<8x32xbf16>,
    } else {
    }
    %c0 = arith.constant 0 : index
    %c0_1 = arith.constant 0 : index
    %c0_2 = arith.constant 0 : index
    %3 = vector.load %arg4[%c0, %c0_1, %c0_2] : memref<1x8x32xf32, #tpu.memory_space<vmem>>, vector<1x8x32xf32>
    %4 = vector.shape_cast %3 : vector<1x8x32xf32> to vector<8x32xf32>
    %5 = arith.truncf %4 : vector<8x32xf32> to vector<8x32xbf16>
    %c0_3 = arith.constant 0 : index
    %c0_4 = arith.constant 0 : index
    %c0_5 = arith.constant 0 : index
    %6 = vector.load %arg5[%c0_3, %c0_4, %c0_5] : memref<1x8x32xf32, #tpu.memory_space<vmem>>, vector<1x8x32xf32>
    %7 = vector.shape_cast %6 : vector<1x8x32xf32> to vector<8x32xf32>
    %8 = arith.truncf %7 : vector<8x32xf32> to vector<8x32xbf16>
    %c0_6 = arith.constant 0 : index
    %c0_7 = arith.constant 0 : index
    %9 = vector.load %arg8[%c0_6, %c0_7] : memref<8x32xbf16, #tpu.memory_space<vmem>>, vector<8x32xbf16>
    %cst = arith.constant dense<0.000000e+00> : vector<8x8xf32>
    %10 = tpu.matmul %9, %5, %cst {dimension_numbers = #tpu.dot_dimension_numbers<[1], [1], [0], [0], [0, 0, 1, 0], [], []>} : vector<8x32xbf16>, vector<8x32xbf16>, vector<8x8xf32> -> vector<8x8xf32>
    %cst_8 = arith.constant dense<0xFF800000> : vector<8xf32>
    %11 = vector.multi_reduction <maximumf>, %10, %cst_8 [1] : vector<8x8xf32> to vector<8xf32>
    %12 = vector.shape_cast %11 : vector<8xf32> to vector<8x1xf32>
    %13 = vector.broadcast %12 : vector<8x1xf32> to vector<8x8xf32>
    %14 = arith.subf %10, %13 : vector<8x8xf32>
    %15 = math.exp %14 : vector<8x8xf32>
    %cst_9 = arith.constant dense<0.000000e+00> : vector<8xf32>
    %16 = vector.multi_reduction <add>, %15, %cst_9 [1] : vector<8x8xf32> to vector<8xf32>
    %17 = vector.shape_cast %16 : vector<8xf32> to vector<8x1xf32>
    %18 = tpu.reciprocal %17 : vector<8x1xf32> -> vector<8x1xf32>
    %19 = vector.broadcast %18 : vector<8x1xf32> to vector<8x8xf32>
    %20 = arith.mulf %15, %19 : vector<8x8xf32>
    %c0_10 = arith.constant 0 : index
    %c0_11 = arith.constant 0 : index
    %c0_12 = arith.constant 0 : index
    %21 = vector.load %arg7[%c0_10, %c0_11, %c0_12] : memref<1x8x8xf32, #tpu.memory_space<vmem>>, vector<1x8x8xf32>
    %22 = vector.shape_cast %21 : vector<1x8x8xf32> to vector<8x8xf32>
    %23 = vector.shape_cast %20 : vector<8x8xf32> to vector<1x8x8xf32>
    tpu.vector_store %arg7[%c0_10, %c0_11, %c0_12], %23 {strides = array<i32>} : memref<1x8x8xf32, #tpu.memory_space<vmem>>, vector<1x8x8xf32>,
    %24 = arith.truncf %20 : vector<8x8xf32> to vector<8x8xbf16>
    %cst_13 = arith.constant dense<0.000000e+00> : vector<8x32xf32>
    %25 = tpu.matmul %24, %8, %cst_13 {dimension_numbers = #tpu.dot_dimension_numbers<[1], [0], [0], [1], [0, 0, 1, 1], [], []>} : vector<8x8xbf16>, vector<8x32xbf16>, vector<8x32xf32> -> vector<8x32xf32>
    %c0_14 = arith.constant 0 : index
    %c0_15 = arith.constant 0 : index
    %c0_16 = arith.constant 0 : index
    %26 = vector.load %arg6[%c0_14, %c0_15, %c0_16] : memref<1x8x32xf32, #tpu.memory_space<vmem>>, vector<1x8x32xf32>
    %27 = vector.shape_cast %26 : vector<1x8x32xf32> to vector<8x32xf32>
    %28 = vector.shape_cast %25 : vector<8x32xf32> to vector<1x8x32xf32>
    tpu.vector_store %arg6[%c0_14, %c0_15, %c0_16], %28 {strides = array<i32>} : memref<1x8x32xf32, #tpu.memory_space<vmem>>, vector<1x8x32xf32>,
    return
  }
  func.func @transform_0(%arg0: i32, %arg1: i32, %arg2: i32) -> (i32, i32, i32) {
    %c0_i32 = arith.constant 0 : i32
    %c0_i32_0 = arith.constant 0 : i32
    return %arg0, %arg1, %c0_i32 : i32, i32, i32
  }
  func.func @transform_1(%arg0: i32, %arg1: i32, %arg2: i32) -> (i32, i32, i32) {
    %c0_i32 = arith.constant 0 : i32
    %c0_i32_0 = arith.constant 0 : i32
    return %arg0, %arg2, %c0_i32 : i32, i32, i32
  }
  func.func @transform_2(%arg0: i32, %arg1: i32, %arg2: i32) -> (i32, i32, i32) {
    %c0_i32 = arith.constant 0 : i32
    %c0_i32_0 = arith.constant 0 : i32
    return %arg0, %arg2, %c0_i32 : i32, i32, i32
  }
  func.func @transform_3(%arg0: i32, %arg1: i32, %arg2: i32) -> (i32, i32, i32) {
    %c0_i32 = arith.constant 0 : i32
    %c0_i32_0 = arith.constant 0 : i32
    return %arg0, %arg1, %c0_i32 : i32, i32, i32
  }
  func.func @transform_4(%arg0: i32, %arg1: i32, %arg2: i32) -> (i32, i32, i32) {
    %c0_i32 = arith.constant 0 : i32
    %c0_i32_0 = arith.constant 0 : i32
    return %arg0, %arg1, %c0_i32 : i32, i32, i32
  }
}

</mosaic_0001>

<bundles_post_ra>
// kernel: tpu_custom_call.1
= control target key start
LH: loop header
LB: loop body
LE: loop exit
PB: predicated region body
PF: predicated region fallthrough
CT: control target
= control target key end

     0   :  { %s1310_s0 = inlined_call_operand.hbm [shape: f32[2,8,32], index: 0, kind: input, shape index: {}]   ;;  %s1311_s1 = inlined_call_operand.hbm [shape: f32[2,8,32], index: 1, kind: input, shape index: {}]   ;;  %s1312_s2 = inlined_call_operand.hbm [shape: f32[2,8,32], index: 2, kind: input, shape index: {}]   ;;  %s1313_s3 = inlined_call_operand.hbm [shape: f32[2,8,32], index: 3, kind: output, shape index: {0}]   ;;  %s1314_s4 = inlined_call_operand.hbm [shape: f32[2,8,8], index: 4, kind: output, shape index: {1}]  }
   0x1   :  { %1323 = sst [smem:[#allocation24_spill]] %s1311_s1 }
   0x2   :  { %10 = vsyncpa [#allocation8], 0 }
   0x3   :  { %12 = vsyncpa [#allocation8 + $0x1], 0 }
   0x4   :  { %13 = vsyncpa [#allocation11], 0 }
   0x5   :  { %15 = vsyncpa [#allocation11 + $0x1], 0 }
   0x6   :  { %16 = vsyncpa [#allocation9], 0 }
   0x7   :  { %18 = vsyncpa [#allocation9 + $0x1], 0 }
   0x8   :  { %19 = vsyncpa [#allocation15], 0 }
   0x9   :  { %21 = vsyncpa [#allocation15 + $0x1], 0  ;;  %s1011_s15 = smov 0   ;;  %s1013_s16 = smov 0  }
   0xa   :  { %s1015_s17 = smov 0   ;;  %s1017_s18 = smov 0  }
   0xb   :  { %s1019_s19 = smov 0   ;;  %s1021_s20 = smov 0  }
   0xc LB: > { %1324 = sst [smem:[#allocation20_spill]] %s973_s19  ;;  %s1042_s21 = sadd.s32 4294967295, %s977_s20   ;;  %s977_s20 = sphi %s1021_s20, %s27_s20   ;;  %s973_s19 = sphi %s1019_s19, %s1348_s19   ;;  %s969_s18 = sphi %s1017_s18, %s1347_s18   ;;  %s965_s17 = sphi %s1015_s17, %s1351_s17   ;;  %s961_s16 = sphi %s1013_s16, %s1350_s16   ;;  %s957_s15 = sphi %s1011_s15, %s1349_s15  }
   0xd   : > { %1325 = sst [smem:[#allocation21_spill]] %s977_s20  ;;  %s647_s22 = sadd.s32 4294967294, %s977_s20  }
   0xe   : > { %s46_s23 = sadd.s32 1, %s973_s19  ;;  %s55_s24 = sadd.s32 1, %s965_s17 }
   0xf   : > { %p48_p0 = scmp.ge.s32.totalorder %s46_s23, 2  ;;  %p62_p1 = scmp.ne.s32.totalorder %s965_s17, %s961_s16 }
  0x10   : > { %p63_p2 = scmp.eq.s32.totalorder %s977_s20, 0  ;;  %p68_p3 = scmp.ne.s32.totalorder %s961_s16, %s957_s15 }
  0x11   : > { %s1353_s23 = smov (%p48_p0, %s46_s23), 0  ;;  %p69_p5 = scmp.eq.s32.totalorder %s1042_s21, 0 }
  0x12   : > { %1326 = sst [smem:[#allocation22_spill]] %s1353_s23  ;;  %p1054_p4 = por %p63_p2, %p62_p1 }
  0x13   : > { %s50_s26 = ssub.s32 %s973_s19, %s1353_s23  ;;  %p150_p6 = scmp.eq.s32.totalorder %s1042_s21, 1 }
  0x14   : > { %p53_p7 = scmp.eq.s32.totalorder %s50_s26, 0  ;;  %p1062_p8 = por %p69_p5, %p68_p3 }
  0x15   : > { %p1066_p9 = por %p150_p6, %p62_p1  ;;  %p156_p10 = scmp.eq.s32.totalorder %s647_s22, 1 }
  0x16   : > { %s1328_s27 = scalar_select %p1062_p8, 1, 0 }
  0x17   : > { %s1329_s28 = scalar_select %p1066_p9, 1, 0 }
  0x18   : > { %s1071_s29 = scalar_select %p53_p7, %s965_s17, %s55_s24  }
  0x19   : > { %p1073_p11 = por %p156_p10, %p68_p3  ;;  %p713_p13 = scmp.lt.s32.totalorder %s977_s20, 2 }
  0x1a   : > { %1330 = sst [smem:[#allocation23_spill]] %s1071_s29  ;;  %s1315_s5 = sand.u32 1, %s965_s17  }
  0x1b   : > { %s1331_s30 = scalar_select %p1073_p11, 1, 0 }
  0x1c   : > { %s1082_s6 = sshll.u32 %s1315_s5, 3  ;;  %s1085_s7 = sshll.u32 %s973_s19, 7 }
  0x1d   : > { %p1089_p0 = pnand %p713_p13, %p1054_p4  ;;  %s223_s9 = sand.u32 1, %s977_s20  }
  0x1e   : > { %s1333_s1 = sld [smem:[#allocation24_spill]]  ;;  %s227_s13 = scalar_lea.vmem [#allocation10], %s1082_s6 }
  0x1f   : > { %s1332_s8 = scalar_select %p1089_p0, 1, 0 }
  0x20   : > { %s235_s14 = sshll.u32 %s227_s13, 4  ;;  %s1105_s22 = scalar_lea.sflag [#allocation11], %s223_s9  ;;  %s1102_s14 = int_to_ptr.vmem [resolvable:$true] %s235_s14 }
  0x21   : > { %p1111_p4 = pneg %p1089_p0 }
  0x24   : > { %s1098_s12 = scalar_lea.hbm %s1333_s1, %s1085_s7  ;;  %s774_s11 = scalar_lea.hbm %s1333_s1, 256 }
  0x25   : > { %s769_s24 = scalar_lea.hbm %s1098_s12, 128  ;;  %p775_p7 = scmp.lt.u32.totalorder %s1098_s12, %s1333_s1 }
  0x26   : > { %p770_p3 = scmp.ne.s32.totalorder %s1098_s12, %s769_s24  ;;  %p776_p10 = scmp.lt.u32.totalorder %s774_s11, %s769_s24 }
  0x27   : > { %p778_p12 = scmp.lt.u32.totalorder %s769_s24, %s1098_s12 }
  0x28   : > { %p772_p5 = pnand %p1111_p4, %p770_p3  ;;  %p777_p13 = por %p776_p10, %p775_p7 }
  0x2a   : > { %p773_p6 = pneg %p772_p5  ;;  %p779_p1 = por %p778_p12, %p777_p13 }
  0x2c   : > { %p780_p2 = pnand %p779_p1, %p773_p6 }
  0x2e   : > { %783 = shalt.err (!%p780_p2)
}
  0x2f   : > { %s784_s9 = scalar_lea.vmem %s1102_s14, 128  ;;  %s979_s26 = smov [#allocation10]  }
  0x30   : > { %p785_p3 = scmp.ne.s32.totalorder %s1102_s14, %s784_s9  ;;  %s789_s10 = sshll.u32 %s979_s26, 4  ;;  %s790_s10 = int_to_ptr.vmem [resolvable:$false] %s789_s10 }
  0x31   : > { %s791_s5 = scalar_lea.vmem %s790_s10, 256  ;;  %p792_p9 = scmp.lt.s32.totalorder %s1102_s14, %s790_s10 }
  0x32   : > { %p787_p5 = pnand %p785_p3, %p1111_p4  ;;  %p793_p8 = scmp.lt.s32.totalorder %s791_s5, %s784_s9 }
  0x34   : > { %p788_p11 = pneg %p787_p5  ;;  %p794_p7 = por %p793_p8, %p792_p9 }
  0x36   : > { %p795_p10 = pnand %p794_p7, %p788_p11 }
  0x38   : > { %798 = shalt.err (!%p795_p10)
}
  0x39   : > { %702 = dma.hbm_to_vmem [thread:$0]  (!%p1089_p0), %s1098_s12, 128, %s1102_s14, %s1105_s22  }
  0x3a   : > { %p1335_p12 = scmp.lt.s32.totalorder %s977_s20, 3  ;;  %p1336_p1 = scmp.ge.s32.totalorder %s977_s20, 1 }
  0x3b   : > { %s1147_s9 = scalar_lea.hbm %s1310_s0, %s1085_s7  ;;  %s208_s26 = scalar_lea.vmem [#allocation7], %s1082_s6 }
  0x3c   : > { %p1139_p2 = pnand %p1336_p1, %p1335_p12  ;;  %s216_s10 = sshll.u32 %s208_s26, 4  ;;  %s1150_s10 = int_to_ptr.vmem [resolvable:$true] %s216_s10 }
  0x3d   : > { %s1156_s5 = scalar_lea.hbm %s1312_s2, %s1085_s7  ;;  %s1338_s1 = sand.u32 1, %s965_s17  }
  0x3e   : > { %s1337_s24 = scalar_select %p1139_p2, 1, 0 }
  0x3f   : > { %s205_s23 = scalar_lea.sflag [#allocation8], %s1338_s1  ;;  %s799_s19 = scalar_lea.hbm %s1147_s9, 128 }
  0x40   : > { %p800_p8 = scmp.ne.s32.totalorder %s1147_s9, %s799_s19  ;;  %s804_s29 = scalar_lea.hbm %s1310_s0, 256 }
  0x41   : > { %p805_p6 = scmp.lt.u32.totalorder %s1147_s9, %s1310_s0  ;;  %p806_p13 = scmp.lt.u32.totalorder %s804_s29, %s799_s19 }
  0x42   : > { %p802_p9 = pnand %p800_p8, %p1111_p4  ;;  %p808_p5 = scmp.lt.u32.totalorder %s799_s19, %s1147_s9 }
  0x43   : > { %p807_p3 = por %p806_p13, %p805_p6 }
  0x44   : > { %p803_p11 = pneg %p802_p9 }
  0x45   : > { %p809_p7 = por %p808_p5, %p807_p3 }
  0x47   : > { %p810_p10 = pnand %p809_p7, %p803_p11 }
  0x49   : > { %813 = shalt.err (!%p810_p10)
}
  0x4a   : > { %s814_s1 = scalar_lea.vmem %s1150_s10, 128  ;;  %s980_s7 = smov [#allocation7]  }
  0x4b   : > { %p815_p12 = scmp.ne.s32.totalorder %s1150_s10, %s814_s1  ;;  %s819_s12 = sshll.u32 %s980_s7, 4  ;;  %s820_s12 = int_to_ptr.vmem [resolvable:$false] %s819_s12 }
  0x4c   : > { %s821_s20 = scalar_lea.vmem %s820_s12, 256  ;;  %p822_p9 = scmp.lt.s32.totalorder %s1150_s10, %s820_s12 }
  0x4d   : > { %p817_p1 = pnand %p815_p12, %p1111_p4  ;;  %p823_p2 = scmp.lt.s32.totalorder %s821_s20, %s814_s1 }
  0x4f   : > { %p818_p8 = pneg %p817_p1  ;;  %p824_p6 = por %p823_p2, %p822_p9 }
  0x51   : > { %p825_p13 = pnand %p824_p6, %p818_p8 }
  0x53   : > { %828 = shalt.err (!%p825_p13)
}
  0x54   : > { %699 = dma.hbm_to_vmem [thread:$0]  (!%p1089_p0), %s1147_s9, 128, %s1150_s10, %s205_s23  }
  0x55   : > { %s246_s19 = scalar_lea.vmem [#allocation12], %s1082_s6  ;;  %s829_s14 = scalar_lea.hbm %s1156_s5, 128 }
  0x56   : > { %s254_s29 = sshll.u32 %s246_s19, 4  ;;  %p830_p11 = scmp.ne.s32.totalorder %s1156_s5, %s829_s14  ;;  %s255_s29 = int_to_ptr.vmem [resolvable:$true] %s254_s29 }
  0x57   : > { %s834_s26 = scalar_lea.hbm %s1312_s2, 256  ;;  %p835_p5 = scmp.lt.u32.totalorder %s1156_s5, %s1312_s2 }
  0x58   : > { %p832_p2 = pnand %p830_p11, %p1111_p4  ;;  %p836_p7 = scmp.lt.u32.totalorder %s834_s26, %s829_s14 }
  0x59   : > { %p838_p12 = scmp.lt.u32.totalorder %s829_s14, %s1156_s5 }
  0x5a   : > { %p833_p3 = pneg %p832_p2  ;;  %p837_p10 = por %p836_p7, %p835_p5 }
  0x5c   : > { %p839_p1 = por %p838_p12, %p837_p10 }
  0x5e   : > { %p840_p8 = pnand %p839_p1, %p833_p3 }
  0x60   : > { %843 = shalt.err (!%p840_p8)
}
  0x61   : > { %s844_s23 = scalar_lea.vmem %s255_s29, 128  ;;  %s981_s6 = smov [#allocation12]  }
  0x62   : > { %p845_p9 = scmp.ne.s32.totalorder %s255_s29, %s844_s23  ;;  %s849_s9 = sshll.u32 %s981_s6, 4  ;;  %s850_s9 = int_to_ptr.vmem [resolvable:$false] %s849_s9 }
  0x63   : > { %s851_s10 = scalar_lea.vmem %s850_s9, 256  ;;  %p852_p11 = scmp.lt.s32.totalorder %s255_s29, %s850_s9 }
  0x64   : > { %p847_p6 = pnand %p845_p9, %p1111_p4  ;;  %p853_p2 = scmp.lt.s32.totalorder %s851_s10, %s844_s23 }
  0x66   : > { %p848_p13 = pneg %p847_p6  ;;  %p854_p0 = por %p853_p2, %p852_p11 }
  0x68   : > { %p855_p5 = pnand %p854_p0, %p848_p13 }
  0x6a   : > { %858 = shalt.err (!%p855_p5)
}
  0x6b   : > { %p1339_p7 = scmp.ne.s32.totalorder %s1332_s8, 0  ;;  %p1340_p3 = scmp.ne.s32.totalorder %s1337_s24, 0 }
  0x6c   : > { %s1203_s25 = sand.u32 (!%p1340_p3), 1, %s961_s16   ;;  %p1341_p0 = scmp.ne.s32.totalorder (!%p1340_p3), %s1328_s27, 0 }
  0x6d   : > { %705 = dma.hbm_to_vmem [thread:$0]  (!%p1339_p7), %s1156_s5, 128, %s255_s29, %s1105_s22  }
  0x6e   : > { %263 = sbr.rel (%p1340_p3) target bundleno = 889 (0x379), region = 32  ;;  %s1206_s12 = sshll.u32 (!%p1340_p3), %s1203_s25, 3 }
  0x6f   : > { %s266_s20 = scalar_lea.sflag (!%p1340_p3), [#allocation8], %s1203_s25  ;;  %s269_s19 = scalar_lea.vmem (!%p1340_p3), [#allocation7], %s1206_s12 }
  0x75   : > { %940 = dma.done.wait (%p1341_p0), %s266_s20, 128  }
  0x76   : > { %942 = vsyncadd (%p1341_p0), %s266_s20, 4294967168  ;;  %s274_s8 = sand.u32 1, %s1042_s21   ;;  %s278_s24 = scalar_lea.vmem [#allocation10], %s1206_s12 }
  0x77   : > { %s275_s22 = scalar_lea.sflag [#allocation11], %s274_s8 }
  0x78   : > { %944 = dma.done.wait (%p1341_p0), %s275_s22, 256  }
  0x79   : > { %946 = vsyncadd (%p1341_p0), %s275_s22, 4294967040  ;;  %v982_v0 = vmov 0.0   ;;  %vm983_vm0 = vmmov 0   ;;  %v332_v1 = vld [vmem:[%s269_s19] sm:$0xff]  ;;  %v337_v2 = vld [vmem:[%s278_s24] sm:$0xff]  ;;  %vm342_vm1 = vcmask 261120  }
  0x7a   : > { %674 = vmatprep.subr.bf16.mxu0 %v982_v0  ;;  %676 = vmatprep.mubr.msk.bf16.mxu0 %vm983_vm0, %v982_v0  ;;  %v333_v3 = vmul.f32 0.17677669, %v332_v1  ;;  %v338_v4 = vpack.c.bf16 %v337_v2, %v337_v2  ;;  %vm335_vm2 = vcmask 257024   ;;  %vm389_vm3 = vcmask 64512   ;;  %s287_s21 = scalar_lea.vmem [#allocation12], %s1206_s12  ;;  %s326_s27 = scalar_lea.vmem [#allocation14], %s1206_s12 }
  0x7b   : > { %680 = vmatprep.subr.bf16.mxu1 %v982_v0  ;;  %682 = vmatprep.mubr.msk.bf16.mxu1 %vm983_vm0, %v982_v0  ;;  %v339_v18 = vld [vmem:[%s287_s21] sm:$0xff]  ;;  %vm406_vm4 = vcmask 1043456   ;;  %s666_s5 = sshll.u32 %s969_s18, 7  ;;  %s485_s13 = sshll.u32 %s326_s27, 4  ;;  %s486_s13 = int_to_ptr.vmem [resolvable:$true] %s485_s13 }
  0x7c   : > { %v334_v5 = vpack.c.bf16 %v333_v3, %v333_v3  ;;  %v347_v6 = vsel %vm342_vm1, %v338_v4, 0  ;;  %v340_v19 = vpack.c.bf16 %v339_v18, %v339_v18  ;;  %s1234_s11 = scalar_lea.hbm %s1314_s4, %s666_s5  ;;  %s457_s26 = scalar_lea.sflag [#allocation15], %s1203_s25 }
  0x7d   : > { %675 = vmatpush3.bf16.xpose.msra.mxu0 %v347_v6  ;;  %s859_s1 = scalar_lea.vmem %s486_s13, 128  ;;  %p1342_p10 = scmp.ne.s32.totalorder %s1329_s28, 0 }
  0x7e   : > { %336 = vst.msk [vmem:[#allocation2] sm:$0xf] %vm335_vm2, %v334_v5  ;;  %v408_v20 = vsel %vm406_vm4, %v340_v19, 0  ;;  %p860_p4 = scmp.ne.s32.totalorder %s486_s13, %s859_s1  ;;  %s984_s7 = smov [#allocation14]  }
  0x7f   : > { %681 = vmatpush3.bf16.msra.mxu1 %v408_v20  ;;  %s863_s23 = sshll.u32 %s984_s7, 4  ;;  %s864_s23 = int_to_ptr.vmem [resolvable:$false] %s863_s23 }
  0x80   : > { %p861_p12 = pnand %p860_p4, %p1342_p10  ;;  %s865_s6 = scalar_lea.vmem %s864_s23, 256 }
  0x81   : > { %p866_p8 = scmp.lt.s32.totalorder %s486_s13, %s864_s23  ;;  %p867_p9 = scmp.lt.s32.totalorder %s865_s6, %s859_s1 }
  0x82   : > { %p862_p1 = pneg %p861_p12 }
  0x83   : > { %p868_p6 = por %p867_p9, %p866_p8 }
  0x85   : > { %v341_v7 = vld [vmem:[#allocation2] sm:$0xf]  ;;  %p869_p13 = pnand %p868_p6, %p862_p1 }
  0x86   : > { %677 = vmatmul.mubr.msk.bf16.vlgmr.msra.gmra.mrb[0].mxu0 %vm342_vm1, %v341_v7 }
 0x159   : > { %v383_v8 = vpop.f32.mrb[0].mxu0 }
 0x15a   : > { %v678_v9 = vpop.f32.mrb[1].mxu0  ;;  %v390_v10 = vsel %vm389_vm3, %v383_v8, -inf }
 0x15b   : > { %391 = vmax.xlane.f32.xlu0 %v390_v10  ;;  %v386_v11 = vpop.f32.mrb[2].mxu0 }
 0x15c   : > { %v679_v12 = vpop.f32.mrb[3].mxu0 }
 0x1e8   : > { %v392_v13 = vpop.xlane.xlu0 %391 }
 0x1e9   : > { %v393_v14 = vsub.f32 %v383_v8, %v392_v13 }
 0x1eb   : > { %v394_v15 = vmul.f32 1.442695, %v393_v14 }
 0x1ed   : > { %765 = vpow2.f32 %v394_v15 }
 0x1f7   : > { %v766_v16 = vpop.eup %765 }
 0x1f8   : > { %v396_v17 = vsel %vm389_vm3, %v766_v16, 0.0 }
 0x1f9   : > { %397 = vadd.xlane.f32.xlu0 %v396_v17 }
 0x286   : > { %v398_v21 = vpop.xlane.xlu0 %397 }
 0x287   : > { %767 = vrcp.f32 %v398_v21 }
 0x291   : > { %v768_v22 = vpop.eup %767 }
 0x292   : > { %v400_v23 = vmul.f32 %v768_v22, %v766_v16 }
 0x294   : > { %v402_v24 = vpack.c.bf16 %v400_v23, %v400_v23  ;;  %401 = vst.msk [vmem:[%s326_s27] sm:$0xff] %vm389_vm3, %v400_v23 }
 0x296   : > { %683 = vmatmul.mubr.msk.bf16.vlgmr.msra.gmra.mrb[0].mxu1 %vm389_vm3, %v402_v24 }
 0x297   : > { %872 = shalt.err (!%p869_p13)
}
 0x298   : > { %s873_s9 = scalar_lea.hbm %s1234_s11, 128  ;;  %s877_s19 = scalar_lea.hbm %s1314_s4, 256 }
 0x299   : > { %p874_p11 = scmp.ne.s32.totalorder %s1234_s11, %s873_s9  ;;  %p878_p7 = scmp.lt.u32.totalorder %s1234_s11, %s1314_s4 }
 0x29a   : > { %p879_p3 = scmp.lt.u32.totalorder %s877_s19, %s873_s9  ;;  %p881_p4 = scmp.lt.u32.totalorder %s873_s9, %s1234_s11 }
 0x29b   : > { %p875_p2 = pnand %p874_p11, %p1342_p10 }
 0x29c   : > { %p880_p0 = por %p879_p3, %p878_p7 }
 0x29d   : > { %p876_p5 = pneg %p875_p2 }
 0x29e   : > { %p882_p12 = por %p881_p4, %p880_p0 }
 0x2a0   : > { %p883_p1 = pnand %p882_p12, %p876_p5 }
 0x2a2   : > { %886 = shalt.err (!%p883_p1)
}
 0x2a3   : > { %693 = dma.vmem_to_hbm [thread:$0]  (%p1342_p10), %s486_s13, 128, %s1234_s11, %s457_s26  }
 0x2a4   : > { %s319_s24 = scalar_lea.vmem [#allocation13], %s1206_s12  ;;  %s1260_s14 = scalar_lea.hbm %s1313_s3, %s666_s5 }
 0x2a5   : > { %s471_s21 = sshll.u32 %s319_s24, 4  ;;  %s452_s1 = scalar_lea.sflag [#allocation9], %s1203_s25  ;;  %s1262_s21 = int_to_ptr.vmem [resolvable:$true] %s471_s21 }
 0x2a6   : > { %s887_s11 = scalar_lea.vmem %s1262_s21, 128  ;;  %s985_s18 = smov [#allocation13]  }
 0x2a7   : > { %p888_p8 = scmp.ne.s32.totalorder %s1262_s21, %s887_s11  ;;  %s891_s12 = sshll.u32 %s985_s18, 4  ;;  %s892_s12 = int_to_ptr.vmem [resolvable:$false] %s891_s12 }
 0x2a8   : > { %s893_s5 = scalar_lea.vmem %s892_s12, 256  ;;  %p894_p13 = scmp.lt.s32.totalorder %s1262_s21, %s892_s12 }
 0x2a9   : > { %p889_p9 = pnand %p888_p8, %p1342_p10  ;;  %p895_p11 = scmp.lt.s32.totalorder %s893_s5, %s887_s11 }
 0x2ab   : > { %p890_p6 = pneg %p889_p9  ;;  %p896_p2 = por %p895_p11, %p894_p13 }
 0x2ad   : > { %p897_p5 = pnand %p896_p2, %p890_p6 }
 0x369   : > { %v444_v25 = vpop.f32.mrb[0].mxu1 }
 0x36a   : > { %450 = vst.msk [vmem:[%s319_s24] sm:$0xff] %vm342_vm1, %v444_v25  ;;  %v684_v26 = vpop.f32.mrb[1].mxu1 }
 0x36b   : > { %v447_v27 = vpop.f32.mrb[2].mxu1 }
 0x36c   : > { %900 = shalt.err (!%p897_p5)
}
 0x36d   : > { %s901_s25 = scalar_lea.hbm %s1260_s14, 128  ;;  %s905_s7 = scalar_lea.hbm %s1313_s3, 256 }
 0x36e   : > { %p902_p7 = scmp.ne.s32.totalorder %s1260_s14, %s901_s25  ;;  %p906_p4 = scmp.lt.u32.totalorder %s1260_s14, %s1313_s3 }
 0x36f   : > { %p907_p12 = scmp.lt.u32.totalorder %s905_s7, %s901_s25  ;;  %p909_p8 = scmp.lt.u32.totalorder %s901_s25, %s1260_s14 }
 0x370   : > { %p903_p3 = pnand %p902_p7, %p1342_p10 }
 0x371   : > { %p908_p1 = por %p907_p12, %p906_p4 }
 0x372   : > { %p904_p0 = pneg %p903_p3 }
 0x373   : > { %p910_p9 = por %p909_p8, %p908_p1 }
 0x375   : > { %p911_p6 = pnand %p910_p9, %p904_p0 }
 0x377   : > { %914 = shalt.err (!%p911_p6)
}
 0x378   : > { %692 = dma.vmem_to_hbm [thread:$0]  (%p1342_p10), %s1262_s21, 128, %s1260_s14, %s452_s1   ;;  %v685_v28 = vpop.f32.mrb[3].mxu1 }
 0x379 PF: > { %s1343_s9 = sld [smem:[#allocation21_spill]]  ;;  %s497_s10 = sand.u32 1, %s957_s15  }
 0x37a   : > { %p1344_p13 = scmp.ne.s32.totalorder %s1331_s30, 0  ;;  %s498_s20 = scalar_lea.sflag [#allocation9], %s497_s10 }
 0x37f   : > { %p1345_p11 = scmp.ge.s32.totalorder %s1343_s9, 2 }
 0x381   : > { %p707_p2 = pnand %p1345_p11, %p1344_p13 }
 0x383   : > { %948 = dma.done.wait (!%p707_p2), %s498_s20, 128  }
 0x384   : > { %950 = vsyncadd (!%p707_p2), %s498_s20, 4294967168  ;;  %s507_s19 = scalar_lea.sflag [#allocation15], %s497_s10 }
 0x385   : > { %952 = dma.done.wait (!%p707_p2), %s507_s19, 128  }
 0x386   : > { %954 = vsyncadd (!%p707_p2), %s507_s19, 4294967168  ;;  %s27_s20 = sadd.s32 1, %s1343_s9   ;;  %s1346_s28 = sld [smem:[#allocation23_spill]] }
 0x387   : > { %p24_p5 = scmp.ge.s32.totalorder %s27_s20, 4   ;;  %s1347_s18 = sld [smem:[#allocation20_spill]] }
 0x388   : > { %s1348_s19 = sld [smem:[#allocation22_spill]]  ;;  %s1349_s15 = smov %s961_s16 }
 0x389   : > { %s1350_s16 = smov %s965_s17  ;;  %26 = sbr.rel (!%p24_p5) target bundleno = 12 (0xc), region = 122 }
 0x38c   : > { %s1351_s17 = smov %s1346_s28 }
 0x390   :  { %512 = vsyncpa [#allocation8], 1 }
 0x391   :  { %514 = vsyncpa [#allocation8 + $0x1], 1 }
 0x392   :  { %515 = vsyncpa [#allocation11], 1 }
 0x393   :  { %517 = vsyncpa [#allocation11 + $0x1], 1 }
 0x394   :  { %518 = vsyncpa [#allocation9], 1 }
 0x395   :  { %520 = vsyncpa [#allocation9 + $0x1], 1 }
 0x396   :  { %521 = vsyncpa [#allocation15], 1 }
 0x397   :  { %523 = vsyncpa [#allocation15 + $0x1], 1 }

</bundles_post_ra>
